<compile_context>
chip_gen: v7x
topology: tpu7x:2x2x1
jax: 0.10.0
libtpu: 0.0.40
codegen_flags: <defaults>
</compile_context>

<pallas_src>
import math

import jax
import jax.numpy as jnp
from jax import lax
from jax.experimental import pallas as pl
from jax.experimental.pallas import tpu as pltpu


def _round_up(x, m):
    return ((x + m - 1) // m) * m


# ----------------------- tiled batched matmul (MXU) -----------------------

def _matmul_kernel(x_ref, w_ref, o_ref, acc_ref):
    @pl.when(pl.program_id(3) == 0)
    def _init():
        acc_ref[...] = jnp.zeros_like(acc_ref)

    acc_ref[...] += jnp.dot(x_ref[...], w_ref[...],
                            preferred_element_type=jnp.float32)

    @pl.when(pl.program_id(3) == pl.num_programs(3) - 1)
    def _store():
        o_ref[...] = acc_ref[...]


def pallas_matmul(x, w, *, tm=256, tk=512, tn=256):
    """Batched matmul: x (S, M, K) @ w (S, K, N) -> (S, M, N) float32.

    Operands are cast to bfloat16 (MXU-native on v5e/v6e/v7x); accumulation is
    f32 in a VMEM scratch.  Dims are zero-padded to vreg/MXU-friendly multiples
    (zeros contribute 0 to the contraction).  Tile targets (256/512/256) keep
    the double-buffered VMEM footprint ~2 MiB, well inside v7x's 64 MiB VMEM.
    """
    S, M, K = x.shape
    Sw, Kw, N = w.shape
    assert S == Sw and K == Kw
    xb = x.astype(jnp.bfloat16)
    wb = w.astype(jnp.bfloat16)
    Mp = _round_up(M, 16)      # bf16 sublane packing = 16
    Kp = _round_up(K, 128)
    Np = _round_up(N, 128)
    tm = min(tm, Mp)
    tk = min(tk, Kp)
    tn = min(tn, Np)
    Mp = _round_up(Mp, tm)
    Kp = _round_up(Kp, tk)
    Np = _round_up(Np, tn)
    if (Mp, Kp) != (M, K):
        xb = jnp.pad(xb, ((0, 0), (0, Mp - M), (0, Kp - K)))
    if (Kp, Np) != (K, N):
        wb = jnp.pad(wb, ((0, 0), (0, Kp - K), (0, Np - N)))
    grid = (S, Mp // tm, Np // tn, Kp // tk)

    out = pl.pallas_call(
        _matmul_kernel,
        out_shape=jax.ShapeDtypeStruct((S, Mp, Np), jnp.float32),
        grid_spec=pltpu.PrefetchScalarGridSpec(
            num_scalar_prefetch=0,
            grid=grid,
            in_specs=[pl.BlockSpec((None, tm, tk), lambda s, i, j, k: (s, i, k)),
                      pl.BlockSpec((None, tk, tn), lambda s, i, j, k: (s, k, j))],
            out_specs=pl.BlockSpec((None, tm, tn), lambda s, i, j, k: (s, i, j)),
            scratch_shapes=[pltpu.VMEM((tm, tn), jnp.float32)]),
        compiler_params=pltpu.CompilerParams(
            dimension_semantics=("parallel", "parallel", "parallel", "arbitrary")),
        cost_estimate=pl.CostEstimate(
            flops=2 * S * Mp * Kp * Np,
            transcendentals=0,
            bytes_accessed=xb.size * 2 + wb.size * 2 + S * Mp * Np * 4),
    )(xb, wb)
    return out[:, :M, :N]


# ------------- per-batch correlation Gram matrix (mean-corr) -------------

def _corr_gram_kernel(q_ref, k_ref, g_ref):
    # q_ref, k_ref: (Lp, HEp) bf16 — contract the feature (lane) axis on the MXU.
    g_ref[...] = lax.dot_general(
        q_ref[...], k_ref[...],
        dimension_numbers=(((1,), (1,)), ((), ())),
        preferred_element_type=jnp.float32)


def pallas_corr_gram(q, k):
    """q, k: (B, L, HE) -> G (B, L, L), G[b, s, t] = sum_n q[b, s, n] * k[b, t, n].

    Downstream only needs mean_value[b, tau] = (1/HE) * sum_t G[b, (t+tau)%L, t],
    so computing G once per batch on the MXU replaces the per-(h, e), per-tau
    rotation loop of the naive circular correlation.
    """
    B, L, HE = q.shape
    Lp = _round_up(L, 16)
    HEp = _round_up(HE, 128)
    qb = q.astype(jnp.bfloat16)
    kb = k.astype(jnp.bfloat16)
    if (Lp, HEp) != (L, HE):
        qb = jnp.pad(qb, ((0, 0), (0, Lp - L), (0, HEp - HE)))
        kb = jnp.pad(kb, ((0, 0), (0, Lp - L), (0, HEp - HE)))
    out = pl.pallas_call(
        _corr_gram_kernel,
        out_shape=jax.ShapeDtypeStruct((B, Lp, Lp), jnp.float32),
        grid_spec=pltpu.PrefetchScalarGridSpec(
            num_scalar_prefetch=0,
            grid=(B,),
            in_specs=[pl.BlockSpec((None, Lp, HEp), lambda b: (b, 0, 0)),
                      pl.BlockSpec((None, Lp, HEp), lambda b: (b, 0, 0))],
            out_specs=pl.BlockSpec((None, Lp, Lp), lambda b: (b, 0, 0))),
        compiler_params=pltpu.CompilerParams(
            dimension_semantics=("parallel",)),
        cost_estimate=pl.CostEstimate(
            flops=2 * B * Lp * Lp * HEp,
            transcendentals=0,
            bytes_accessed=qb.size * 2 + kb.size * 2 + B * Lp * Lp * 4),
    )(qb, kb)
    return out[:, :L, :L]


# -------------------- top-k time-delay aggregation --------------------

def _delay_agg_kernel(idx_ref, w_ref, v2_ref, o_ref):
    # idx_ref: (top_k,) int32 — scalar-prefetched delay indices (SMEM).
    # w_ref:   (B, top_k) f32 — softmax weights, SMEM-resident.
    # v2_ref:  (S2, tn) f32   — values doubled along time (circular-shift buffer).
    # o_ref:   (L, tn)  f32.
    b = pl.program_id(0)
    L = o_ref.shape[0]
    o_ref[...] = w_ref[b, 0] * v2_ref[pl.ds(idx_ref[0], L), :]
    for i in range(1, idx_ref.shape[0]):        # top_k ~= log(L): tiny static loop
        o_ref[...] += w_ref[b, i] * v2_ref[pl.ds(idx_ref[i], L), :]


def pallas_delay_agg(values, index, tmp_corr, *, tn=512):
    """out[b, t, n] = sum_i tmp_corr[b, i] * values[b, (t + index[i]) % L, n].

    values: (B, L, N) f32; index: (top_k,) int32; tmp_corr: (B, top_k) f32.
    Each circular shift is a dynamic sublane slice of a time-doubled copy of
    values; only top_k weighted slices are accumulated instead of a dense
    (L x L) delay-mixing matmul (elementwise math stays f32, v5e-friendly).
    """
    B, L, N = values.shape
    Np = _round_up(N, 128)
    tn = min(tn, Np)
    Np = _round_up(Np, tn)
    S2 = _round_up(2 * L, 8)
    v2 = jnp.concatenate([values, values], axis=1)             # (B, 2L, N)
    v2 = jnp.pad(v2, ((0, 0), (0, S2 - 2 * L), (0, Np - N)))
    grid = (B, Np // tn)
    out = pl.pallas_call(
        _delay_agg_kernel,
        out_shape=jax.ShapeDtypeStruct((B, L, Np), jnp.float32),
        grid_spec=pltpu.PrefetchScalarGridSpec(
            num_scalar_prefetch=1,
            grid=grid,
            in_specs=[pl.BlockSpec(memory_space=pltpu.MemorySpace.SMEM),
                      pl.BlockSpec((None, S2, tn), lambda b, j, idx: (b, 0, j))],
            out_specs=pl.BlockSpec((None, L, tn), lambda b, j, idx: (b, 0, j))),
        compiler_params=pltpu.CompilerParams(
            dimension_semantics=("parallel", "parallel")),
    )(index, tmp_corr, v2)
    return out[:, :, :N]


# ---------------------------- Module wrapper ----------------------------

class MultiHeadAttentionPallas:
    def __init__(self, d_model, d_k, d_v, n_heads, attn_type, seed):
        self.d_model = d_model
        self.d_k = d_k
        self.d_v = d_v
        self.n_heads = n_heads
        self.attn_type = attn_type
        self.factor = 1  # AutoCorrelation default

        key = jax.random.PRNGKey(seed)
        kq, kk, kv, kf = jax.random.split(key, 4)

        def linear_w(k, out_f, in_f):
            # deterministic init mimicking nn.Linear default U(-1/sqrt(in), 1/sqrt(in))
            bound = 1.0 / math.sqrt(in_f)
            return jax.random.uniform(k, (out_f, in_f), jnp.float32, -bound, bound)

        # PyTorch Linear weight layout: (out_features, in_features).  Store the
        # transposed, bf16 (MXU input dtype) copies once so there is no
        # per-forward transpose / cast.
        WQ = linear_w(kq, d_k * n_heads, d_model)
        WK = linear_w(kk, d_k * n_heads, d_model)
        WV = linear_w(kv, d_v * n_heads, d_model)
        fc = linear_w(kf, d_model, n_heads * d_v)
        self.WQ_T = WQ.T.astype(jnp.bfloat16)
        self.WK_T = WK.T.astype(jnp.bfloat16)
        self.WV_T = WV.T.astype(jnp.bfloat16)
        self.fc_T = fc.T.astype(jnp.bfloat16)
        # Fused QKV weight stack (valid whenever d_k == d_v).
        self.w_qkv_T = (jnp.stack([self.WQ_T, self.WK_T, self.WV_T], axis=0)
                        if d_k == d_v else None)

    def __call__(self, Q, K, V):
        B = Q.shape[0]
        H, dk, dv, dm = self.n_heads, self.d_k, self.d_v, self.d_model

        if self.w_qkv_T is not None and Q.shape == K.shape == V.shape:
            # Fused QKV projection: one pallas_call / one activation DMA.
            x_stack = jnp.stack([Q.reshape(-1, dm), K.reshape(-1, dm),
                                 V.reshape(-1, dm)], axis=0)          # (3, B*L, dm)
            qkv = pallas_matmul(x_stack, self.w_qkv_T)                # (3, B*L, H*dk)
            q_s = qkv[0].reshape(B, -1, H * dk)
            k_s = qkv[1].reshape(B, -1, H * dk)
            v_s = qkv[2].reshape(B, -1, H * dv)
        else:
            q_s = pallas_matmul(Q.reshape(-1, dm)[None],
                                self.WQ_T[None])[0].reshape(B, -1, H * dk)
            k_s = pallas_matmul(K.reshape(-1, dm)[None],
                                self.WK_T[None])[0].reshape(B, -1, H * dk)
            v_s = pallas_matmul(V.reshape(-1, dm)[None],
                                self.WV_T[None])[0].reshape(B, -1, H * dv)

        # AutoCorrelation (training-mode time-delay aggregation, factor = 1).
        context = self._autocorrelation(q_s, k_s, v_s)    # (B, L, H*dv) == (B, L, H, dv)

        # Literal replication of:
        #   context.transpose(1, 2).contiguous().view(B, -1, H * d_v)
        L = context.shape[1]
        context = context.reshape(B, L, H, dv)
        context = jnp.transpose(context, (0, 2, 1, 3)).reshape(B, -1, H * dv)
        out = pallas_matmul(context.reshape(-1, H * dv)[None], self.fc_T[None])[0]
        return out.reshape(B, -1, dm)

    def _autocorrelation(self, q_s, k_s, v_s):
        """Autoformer AutoCorrelation (training-mode aggregation), flat-head layout.

        q_s, k_s: (B, Lq, H*dk); v_s: (B, S, H*dv).  Returns (B, Lq, H*dv) equal
        to the reference context (B, L, H, dv) flattened over (H, dv).
        """
        B, L, HE = q_s.shape
        S = v_s.shape[1]
        if L > S:
            k_s = jnp.pad(k_s, ((0, 0), (0, L - S), (0, 0)))
            v_s = jnp.pad(v_s, ((0, 0), (0, L - S), (0, 0)))
        else:
            k_s = k_s[:, :L]
            v_s = v_s[:, :L]

        # mean (over heads/channels) circular correlation, identical to
        # mean_{h,e} irfft(rfft(q) * conj(rfft(k))):
        #   mean_value[b, tau] = (1/HE) * sum_t G[b, (t+tau)%L, t]
        G = pallas_corr_gram(q_s, k_s)                                 # (B, L, L)
        t_idx = jnp.arange(L)
        rows = (t_idx[None, :] + t_idx[:, None]) % L                   # (tau, t)
        mean_value = G[:, rows, t_idx[None, :]].sum(axis=-1) / float(HE)  # (B, L)

        # Top-k delays (shared over the batch), per-batch softmax weights.
        top_k = int(self.factor * math.log(L))
        top_k = max(1, min(top_k, L))   # guard degenerate small L
        _, index = lax.top_k(jnp.mean(mean_value, axis=0), top_k)      # (top_k,)
        weights = jnp.take(mean_value, index, axis=1)                  # (B, top_k)
        tmp_corr = jax.nn.softmax(weights, axis=-1)                    # (B, top_k)

        # TODO(synk): attention_dropout (identity here).
        return pallas_delay_agg(v_s, index.astype(jnp.int32), tmp_corr)


# ---------------------------- Demo ----------------------------

if __name__ == "__main__":
    B, L = 2, 8
    d_model, d_k, d_v, n_heads = 32, 8, 8, 4

    mha = MultiHeadAttentionPallas(d_model, d_k, d_v, n_heads,
                                   attn_type="autocorrelation", seed=0)

    key = jax.random.PRNGKey(0)
    kq, kk, kv = jax.random.split(key, 3)
    Q = jax.random.normal(kq, (B, L, d_model), jnp.float32)
    K = jax.random.normal(kk, (B, L, d_model), jnp.float32)
    V = jax.random.normal(kv, (B, L, d_model), jnp.float32)

    out = mha(Q, K, V)
    jax.block_until_ready(out)
    assert out.shape == (B, L, d_model)
    print("KERNEL_OK")
</pallas_src>

<mosaic_0001>
module attributes {stable_mosaic.version = 11 : i64} {
  func.func @_matmul_kernel(%arg0: i32, %arg1: i32, %arg2: i32, %arg3: i32, %arg4: memref<1x16x128xbf16, #tpu.memory_space<vmem>>, %arg5: memref<1x128x128xbf16, #tpu.memory_space<vmem>>, %arg6: memref<1x16x128xf32, #tpu.memory_space<vmem>>, %arg7: memref<16x128xf32, #tpu.memory_space<vmem>>) attributes {dimension_semantics = [#tpu.dimension_semantics<parallel>, #tpu.dimension_semantics<parallel>, #tpu.dimension_semantics<parallel>, #tpu.dimension_semantics<arbitrary>], iteration_bounds = array<i64: 3, 1, 1, 1>, scalar_prefetch = 0 : i64, scratch_operands = 1 : i64, tpu.core_type = #tpu.core_type<tc>, window_params = [{transform_indices = @transform_0, window_bounds = array<i64: 1, 16, 128>}, {transform_indices = @transform_1, window_bounds = array<i64: 1, 128, 128>}, {transform_indices = @transform_2, window_bounds = array<i64: 1, 16, 128>}]} {
    %c0_i32 = arith.constant 0 : i32
    %0 = arith.cmpi eq, %arg3, %c0_i32 : i32
    %1 = arith.extui %0 : i1 to i32
    %c0_i32_0 = arith.constant 0 : i32
    %2 = arith.cmpi ne, %1, %c0_i32_0 : i32
    scf.if %2 {
      %cst_12 = arith.constant 0.000000e+00 : f32
      %14 = vector.broadcast %cst_12 : f32 to vector<16x128xf32>
      %c0_13 = arith.constant 0 : index
      %c0_14 = arith.constant 0 : index
      %15 = vector.load %arg7[%c0_13, %c0_14] : memref<16x128xf32, #tpu.memory_space<vmem>>, vector<16x128xf32>
      tpu.vector_store %arg7[%c0_13, %c0_14], %14 {strides = array<i32>} : memref<16x128xf32, #tpu.memory_space<vmem>>, vector<16x128xf32>,
    } else {
    }
    %c0 = arith.constant 0 : index
    %c0_1 = arith.constant 0 : index
    %3 = vector.load %arg7[%c0, %c0_1] : memref<16x128xf32, #tpu.memory_space<vmem>>, vector<16x128xf32>
    %c0_2 = arith.constant 0 : index
    %c0_3 = arith.constant 0 : index
    %c0_4 = arith.constant 0 : index
    %4 = vector.load %arg4[%c0_2, %c0_3, %c0_4] : memref<1x16x128xbf16, #tpu.memory_space<vmem>>, vector<1x16x128xbf16>
    %5 = vector.shape_cast %4 : vector<1x16x128xbf16> to vector<16x128xbf16>
    %c0_5 = arith.constant 0 : index
    %c0_6 = arith.constant 0 : index
    %c0_7 = arith.constant 0 : index
    %6 = vector.load %arg5[%c0_5, %c0_6, %c0_7] : memref<1x128x128xbf16, #tpu.memory_space<vmem>>, vector<1x128x128xbf16>
    %7 = vector.shape_cast %6 : vector<1x128x128xbf16> to vector<128x128xbf16>
    %cst = arith.constant dense<0.000000e+00> : vector<16x128xf32>
    %8 = tpu.matmul %5, %7, %cst {dimension_numbers = #tpu.dot_dimension_numbers<[1], [0], [0], [1], [0, 0, 1, 1], [], []>} : vector<16x128xbf16>, vector<128x128xbf16>, vector<16x128xf32> -> vector<16x128xf32>
    %9 = arith.addf %3, %8 : vector<16x128xf32>
    %c0_8 = arith.constant 0 : index
    %c0_9 = arith.constant 0 : index
    %10 = vector.load %arg7[%c0_8, %c0_9] : memref<16x128xf32, #tpu.memory_space<vmem>>, vector<16x128xf32>
    tpu.vector_store %arg7[%c0_8, %c0_9], %9 {strides = array<i32>} : memref<16x128xf32, #tpu.memory_space<vmem>>, vector<16x128xf32>,
    %c0_i32_10 = arith.constant 0 : i32
    %11 = arith.cmpi eq, %arg3, %c0_i32_10 : i32
    %12 = arith.extui %11 : i1 to i32
    %c0_i32_11 = arith.constant 0 : i32
    %13 = arith.cmpi ne, %12, %c0_i32_11 : i32
    scf.if %13 {
      %c0_12 = arith.constant 0 : index
      %c0_13 = arith.constant 0 : index
      %14 = vector.load %arg7[%c0_12, %c0_13] : memref<16x128xf32, #tpu.memory_space<vmem>>, vector<16x128xf32>
      %c0_14 = arith.constant 0 : index
      %c0_15 = arith.constant 0 : index
      %c0_16 = arith.constant 0 : index
      %15 = vector.load %arg6[%c0_14, %c0_15, %c0_16] : memref<1x16x128xf32, #tpu.memory_space<vmem>>, vector<1x16x128xf32>
      %16 = vector.shape_cast %15 : vector<1x16x128xf32> to vector<16x128xf32>
      %17 = vector.shape_cast %14 : vector<16x128xf32> to vector<1x16x128xf32>
      tpu.vector_store %arg6[%c0_14, %c0_15, %c0_16], %17 {strides = array<i32>} : memref<1x16x128xf32, #tpu.memory_space<vmem>>, vector<1x16x128xf32>,
    } else {
    }
    return
  }
  func.func @transform_0(%arg0: i32, %arg1: i32, %arg2: i32, %arg3: i32) -> (i32, i32, i32) {
    %c0_i32 = arith.constant 0 : i32
    return %arg0, %arg1, %arg3 : i32, i32, i32
  }
  func.func @transform_1(%arg0: i32, %arg1: i32, %arg2: i32, %arg3: i32) -> (i32, i32, i32) {
    %c0_i32 = arith.constant 0 : i32
    return %arg0, %arg3, %arg2 : i32, i32, i32
  }
  func.func @transform_2(%arg0: i32, %arg1: i32, %arg2: i32, %arg3: i32) -> (i32, i32, i32) {
    %c0_i32 = arith.constant 0 : i32
    return %arg0, %arg1, %arg2 : i32, i32, i32
  }
}

</mosaic_0001>

<bundles_post_ra>
// kernel: tpu_custom_call.1
= control target key start
LH: loop header
LB: loop body
LE: loop exit
PB: predicated region body
PF: predicated region fallthrough
CT: control target
= control target key end

     0   :  { %7 = vsyncpa [#allocation4], 0  ;;  %s1068_s0 = inlined_call_operand.hbm [shape: bf16[3,16,128], index: 0, kind: input, shape index: {}]   ;;  %s1069_s1 = inlined_call_operand.hbm [shape: bf16[3,128,128], index: 1, kind: input, shape index: {}]   ;;  %s1070_s2 = inlined_call_operand.hbm [shape: f32[3,16,128], index: 2, kind: output, shape index: {}]  }
   0x1   :  { %9 = vsyncpa [#allocation4 + $0x1], 0 }
   0x2   :  { %10 = vsyncpa [#allocation7], 0 }
   0x3   :  { %12 = vsyncpa [#allocation7 + $0x1], 0 }
   0x4   :  { %13 = vsyncpa [#allocation5], 0 }
   0x5   :  { %15 = vsyncpa [#allocation5 + $0x1], 0  ;;  %s835_s9 = smov 0   ;;  %s837_s10 = smov 0  }
   0x6   :  { %s839_s11 = smov 0   ;;  %s841_s12 = smov 0  }
   0x7   :  { %s843_s13 = smov 0   ;;  %s845_s14 = smov 0  }
   0x8 LB: > { %s521_s15 = sadd.s32 4294967295, %s809_s14   ;;  %s522_s16 = sadd.s32 4294967294, %s809_s14   ;;  %s809_s14 = sphi %s845_s14, %s21_s14   ;;  %s805_s13 = sphi %s843_s13, %s1087_s13   ;;  %s801_s12 = sphi %s841_s12, %s1086_s12   ;;  %s797_s11 = sphi %s839_s11, %s1085_s11   ;;  %s793_s10 = sphi %s837_s10, %s1084_s10   ;;  %s789_s9 = sphi %s835_s9, %s1083_s9  }
   0x9   : > { %s47_s17 = sadd.s32 1, %s805_s13  ;;  %s58_s18 = sadd.s32 1, %s797_s11 }
   0xa   : > { %p49_p0 = scmp.ge.s32.totalorder %s47_s17, 3  ;;  %p65_p1 = scmp.ne.s32.totalorder %s797_s11, %s793_s10 }
   0xb   : > { %p66_p2 = scmp.eq.s32.totalorder %s809_s14, 0  ;;  %p71_p3 = scmp.ne.s32.totalorder %s793_s10, %s789_s9 }
   0xc   : > { %s1089_s17 = smov (%p49_p0, %s47_s17), 0  ;;  %p72_p5 = scmp.eq.s32.totalorder %s521_s15, 0 }
   0xd   : > { %p876_p4 = por %p66_p2, %p65_p1  ;;  %s51_s20 = ssub.s32 %s805_s13, %s1089_s17 }
   0xe   : > { %p129_p6 = scmp.eq.s32.totalorder %s521_s15, 2  ;;  %p56_p7 = scmp.eq.s32.totalorder %s51_s20, 0 }
   0xf   : > { %p882_p8 = por %p72_p5, %p71_p3  ;;  %p135_p10 = scmp.eq.s32.totalorder %s522_s16, 2 }
  0x10   : > { %p886_p9 = por %p129_p6, %p65_p1  ;;  %p598_p12 = scmp.lt.s32.totalorder %s809_s14, 3 }
  0x11   : > { %s1074_s21 = scalar_select %p882_p8, 1, 0 }
  0x12   : > { %s1075_s22 = scalar_select %p886_p9, 1, 0 }
  0x13   : > { %s891_s23 = scalar_select %p56_p7, %s797_s11, %s58_s18  }
  0x14   : > { %p893_p11 = por %p135_p10, %p71_p3  ;;  %s899_s25 = sand.u32 1, %s797_s11  }
  0x15   : > { %s525_s26 = sshll.u32 %s899_s25, 3  ;;  %s549_s27 = sshll.u32 %s805_s13, 7 }
  0x16   : > { %s1076_s24 = scalar_select %p893_p11, 1, 0 }
  0x17   : > { %s906_s30 = scalar_lea.hbm %s1068_s0, %s549_s27  ;;  %s159_s3 = scalar_lea.vmem [#allocation3], %s525_s26 }
  0x18   : > { %s169_s4 = sshll.u32 %s159_s3, 4  ;;  %p912_p13 = pnand %p598_p12, %p876_p4  ;;  %s908_s4 = int_to_ptr.vmem [resolvable:$true] %s169_s4 }
  0x19   : > { %s156_s6 = scalar_lea.sflag [#allocation4], %s899_s25  ;;  %s663_s7 = scalar_lea.hbm %s906_s30, 128 }
  0x1a   : > { %p664_p1 = scmp.ne.s32.totalorder %s906_s30, %s663_s7  ;;  %p665_p2 = pneg %p912_p13 }
  0x1b   : > { %s668_s16 = scalar_lea.hbm %s1068_s0, 384  ;;  %p669_p4 = scmp.lt.u32.totalorder %s906_s30, %s1068_s0 }
  0x1c   : > { %p666_p3 = pnand %p665_p2, %p664_p1  ;;  %p670_p6 = scmp.lt.u32.totalorder %s668_s16, %s663_s7 }
  0x1d   : > { %p672_p10 = scmp.lt.u32.totalorder %s663_s7, %s906_s30 }
  0x1e   : > { %p667_p5 = pneg %p666_p3  ;;  %p671_p7 = por %p670_p6, %p669_p4 }
  0x20   : > { %p673_p12 = por %p672_p10, %p671_p7 }
  0x22   : > { %p674_p0 = pnand %p673_p12, %p667_p5 }
  0x24   : > { %677 = shalt.err (!%p674_p0)
}
  0x25   : > { %s678_s20 = scalar_lea.vmem %s908_s4, 128  ;;  %s811_s26 = smov [#allocation3]  }
  0x26   : > { %p679_p1 = scmp.ne.s32.totalorder %s908_s4, %s678_s20  ;;  %s683_s27 = sshll.u32 %s811_s26, 4  ;;  %s684_s27 = int_to_ptr.vmem [resolvable:$false] %s683_s27 }
  0x27   : > { %s685_s28 = scalar_lea.vmem %s684_s27, 256  ;;  %p686_p9 = scmp.lt.s32.totalorder %s908_s4, %s684_s27 }
  0x28   : > { %p681_p3 = pnand %p679_p1, %p665_p2  ;;  %p687_p4 = scmp.lt.s32.totalorder %s685_s28, %s678_s20 }
  0x2a   : > { %p682_p11 = pneg %p681_p3  ;;  %p688_p6 = por %p687_p4, %p686_p9 }
  0x2c   : > { %p689_p7 = pnand %p688_p6, %p682_p11 }
  0x2e   : > { %692 = shalt.err (!%p689_p7)
}
  0x2f   : > { %s812_s29 = smov 64   ;;  %s813_s3 = smov 4  }
  0x30   : > { %590 = dma.hbm_to_vmem [thread:$0]  (!%p912_p13), %s906_s30, 128, %s908_s4, %s156_s6, %s812_s29, %s812_s29, %s813_s3  }
  0x31   : > { %p201_p9 = scmp.lt.s32.totalorder %s809_s14, 4  ;;  %s528_s7 = sshll.u32 %s899_s25, 6 }
  0x32   : > { %s550_s8 = sshll.u32 %s805_s13, 10  ;;  %p1078_p11 = scmp.ge.s32.totalorder %s809_s14, 1 }
  0x33   : > { %s960_s19 = scalar_lea.hbm %s1069_s1, %s550_s8  ;;  %s183_s20 = scalar_lea.vmem [#allocation6], %s528_s7 }
  0x34   : > { %p953_p0 = pnand %p1078_p11, %p201_p9  ;;  %s193_s26 = sshll.u32 %s183_s20, 4  ;;  %s962_s26 = int_to_ptr.vmem [resolvable:$true] %s193_s26 }
  0x35   : > { %s180_s30 = scalar_lea.sflag [#allocation7], %s899_s25  ;;  %s693_s4 = scalar_lea.hbm %s960_s19, 1024 }
  0x36   : > { %p694_p5 = scmp.ne.s32.totalorder %s960_s19, %s693_s4  ;;  %s698_s28 = scalar_lea.hbm %s1069_s1, 3072 }
  0x37   : > { %p699_p1 = scmp.lt.u32.totalorder %s960_s19, %s1069_s1  ;;  %p700_p3 = scmp.lt.u32.totalorder %s698_s28, %s693_s4 }
  0x38   : > { %p696_p10 = pnand %p694_p5, %p665_p2  ;;  %p702_p6 = scmp.lt.u32.totalorder %s693_s4, %s960_s19 }
  0x39   : > { %p701_p4 = por %p700_p3, %p699_p1 }
  0x3a   : > { %p697_p12 = pneg %p696_p10 }
  0x3b   : > { %p703_p7 = por %p702_p6, %p701_p4 }
  0x3d   : > { %p704_p9 = pnand %p703_p7, %p697_p12 }
  0x3f   : > { %707 = shalt.err (!%p704_p9)
}
  0x40   : > { %s708_s7 = scalar_lea.vmem %s962_s26, 1024  ;;  %s814_s18 = smov [#allocation6]  }
  0x41   : > { %p709_p11 = scmp.ne.s32.totalorder %s962_s26, %s708_s7  ;;  %s713_s20 = sshll.u32 %s814_s18, 4  ;;  %s714_s20 = int_to_ptr.vmem [resolvable:$false] %s713_s20 }
  0x42   : > { %s715_s6 = scalar_lea.vmem %s714_s20, 2048  ;;  %p716_p8 = scmp.lt.s32.totalorder %s962_s26, %s714_s20 }
  0x43   : > { %p711_p5 = pnand %p709_p11, %p665_p2  ;;  %p717_p1 = scmp.lt.s32.totalorder %s715_s6, %s708_s7 }
  0x45   : > { %p712_p10 = pneg %p711_p5  ;;  %p718_p3 = por %p717_p1, %p716_p8 }
  0x47   : > { %p719_p4 = pnand %p718_p3, %p712_p10 }
  0x49   : > { %722 = shalt.err (!%p719_p4)
}
  0x4a   : > { %593 = dma.hbm_to_vmem [thread:$0]  (!%p912_p13), %s960_s19, 1024, %s962_s26, %s180_s30, %s812_s29, %s812_s29, %s813_s3  }
  0x4b   : > { %205 = sbr.rel (%p953_p0) target bundleno = 348 (0x15c), region = 28  ;;  %s996_s4 = sand.u32 (!%p953_p0), 1, %s793_s10  }
  0x4c   : > { %s532_s27 = sshll.u32 (!%p953_p0), %s996_s4, 3  ;;  %s208_s28 = scalar_lea.sflag (!%p953_p0), [#allocation4], %s996_s4 }
  0x4d   : > { %s1000_s5 = scalar_lea.vmem (!%p953_p0), [#allocation3], %s532_s27  ;;  %p1080_p8 = scmp.ne.s32.totalorder (!%p953_p0), %s1074_s21, 0 }
  0x52   : > { %776 = dma.done.wait (%p1080_p8), %s208_s28, 128  }
  0x53   : > { %778 = vsyncadd (%p1080_p8), %s208_s28, 4294967168  ;;  %s533_s25 = sshll.u32 %s996_s4, 6  ;;  %s217_s29 = scalar_lea.sflag [#allocation7], %s996_s4 }
  0x54   : > { %s220_s3 = scalar_lea.vmem [#allocation6], %s533_s25 }
  0x55   : > { %780 = dma.done.wait (%p1080_p8), %s217_s29, 1024  }
  0x56   : > { %782 = vsyncadd (%p1080_p8), %s217_s29, 4294966272  ;;  %v815_v0 = vmov 0.0   ;;  %vm816_vm0 = vmmov 0   ;;  %v654_v1 = vld [vmem:[%s220_s3] sm:$0xff]   ;;  %v655_v2 = vld [vmem:[%s220_s3 + $0x8] sm:$0xff]   ;;  %s534_s21 = sshll.u32 %s996_s4, 4 }
  0x57   : > { %561 = vmatprep.subr.bf16.mxu0 %v815_v0  ;;  %577 = vmatprep.mubr.msk.bf16.mxu0 %vm816_vm0, %v815_v0  ;;  %v656_v3 = vld [vmem:[%s220_s3 + $0x10] sm:$0xff]   ;;  %v657_v4 = vld [vmem:[%s220_s3 + $0x18] sm:$0xff]   ;;  %v658_v5 = vld [vmem:[%s220_s3 + $0x20] sm:$0xff]   ;;  %s245_s15 = scalar_lea.vmem [#allocation8], %s534_s21  ;;  %s551_s26 = sshll.u32 %s801_s12, 8 }
  0x58   : > { %562 = vmatpush3.bf16.msra.mxu0 %v654_v1  ;;  %v659_v6 = vld [vmem:[%s220_s3 + $0x28] sm:$0xff]   ;;  %v660_v7 = vld [vmem:[%s220_s3 + $0x30] sm:$0xff]   ;;  %v661_v8 = vld [vmem:[%s220_s3 + $0x38] sm:$0xff]   ;;  %s399_s19 = sshll.u32 %s245_s15, 4  ;;  %s1020_s16 = scalar_lea.hbm %s1070_s2, %s551_s26  ;;  %s1015_s19 = int_to_ptr.vmem [resolvable:$true] %s399_s19 }
  0x59   : > { %563 = vmatprep.subr.bf16.mxu0 %v815_v0  ;;  %v662_v9 = vld [vmem:[%s1000_s5] sm:$0xff]   ;;  %s383_s7 = scalar_lea.sflag [#allocation5], %s996_s4  ;;  %s723_s18 = scalar_lea.vmem %s1015_s19, 256 }
  0x5a   : > { %p724_p13 = scmp.ne.s32.totalorder %s1015_s19, %s723_s18  ;;  %p1081_p2 = scmp.ne.s32.totalorder %s1075_s22, 0 }
  0x5b   : > { %s817_s12 = smov [#allocation8]  }
  0x5c   : > { %564 = vmatpush3.bf16.msra.mxu0 %v655_v2  ;;  %p725_p0 = pnand %p724_p13, %p1081_p2  ;;  %s727_s20 = sshll.u32 %s817_s12, 4  ;;  %s728_s20 = int_to_ptr.vmem [resolvable:$false] %s727_s20 }
  0x5d   : > { %565 = vmatprep.subr.bf16.mxu0 %v815_v0  ;;  %s729_s6 = scalar_lea.vmem %s728_s20, 512  ;;  %p730_p6 = scmp.lt.s32.totalorder %s1015_s19, %s728_s20 }
  0x5e   : > { %p726_p12 = pneg %p725_p0  ;;  %p731_p7 = scmp.lt.s32.totalorder %s729_s6, %s723_s18 }
  0x60   : > { %566 = vmatpush3.bf16.msra.mxu0 %v656_v3  ;;  %p732_p9 = por %p731_p7, %p730_p6 }
  0x61   : > { %567 = vmatprep.subr.bf16.mxu0 %v815_v0 }
  0x62   : > { %p733_p11 = pnand %p732_p9, %p726_p12 }
  0x64   : > { %568 = vmatpush3.bf16.msra.mxu0 %v657_v4 }
  0x65   : > { %569 = vmatprep.subr.bf16.mxu0 %v815_v0 }
  0x68   : > { %570 = vmatpush3.bf16.msra.mxu0 %v658_v5 }
  0x69   : > { %571 = vmatprep.subr.bf16.mxu0 %v815_v0 }
  0x6c   : > { %572 = vmatpush3.bf16.msra.mxu0 %v659_v6 }
  0x6d   : > { %573 = vmatprep.subr.bf16.mxu0 %v815_v0 }
  0x70   : > { %574 = vmatpush3.bf16.msra.mxu0 %v660_v7 }
  0x71   : > { %575 = vmatprep.subr.bf16.mxu0 %v815_v0 }
  0x74   : > { %576 = vmatpush3.bf16.msra.mxu0 %v661_v8 }
  0x77   : > { %578 = vmatmul.mubr.bf16.vlgmr.msra.gmra.mrb[0].mxu0 %v662_v9 }
 0x14a   : > { %v364_v10 = vpop.f32.mrb[0].mxu0 }
 0x14b   : > { %380 = vst [vmem:[%s245_s15] sm:$0xff] %v364_v10  ;;  %v579_v11 = vpop.f32.mrb[1].mxu0 }
 0x14c   : > { %v367_v12 = vpop.f32.mrb[2].mxu0 }
 0x14d   : > { %381 = vst [vmem:[%s245_s15 + $0x8] sm:$0xff] %v367_v12  ;;  %v580_v13 = vpop.f32.mrb[3].mxu0 }
 0x14e   : > { %736 = shalt.err (!%p733_p11)
}
 0x14f   : > { %s737_s27 = scalar_lea.hbm %s1020_s16, 256  ;;  %s741_s25 = scalar_lea.hbm %s1070_s2, 768 }
 0x150   : > { %p738_p5 = scmp.ne.s32.totalorder %s1020_s16, %s737_s27  ;;  %p742_p3 = scmp.lt.u32.totalorder %s1020_s16, %s1070_s2 }
 0x151   : > { %p743_p4 = scmp.lt.u32.totalorder %s741_s25, %s737_s27  ;;  %p745_p13 = scmp.lt.u32.totalorder %s737_s27, %s1020_s16 }
 0x152   : > { %p739_p10 = pnand %p738_p5, %p1081_p2 }
 0x153   : > { %p744_p8 = por %p743_p4, %p742_p3 }
 0x154   : > { %p740_p1 = pneg %p739_p10 }
 0x155   : > { %p746_p0 = por %p745_p13, %p744_p8 }
 0x157   : > { %p747_p12 = pnand %p746_p0, %p740_p1 }
 0x159   : > { %750 = shalt.err (!%p747_p12)
}
 0x15a   : > { %s818_s21 = smov 128   ;;  %s819_s15 = smov 8  }
 0x15b   : > { %585 = dma.vmem_to_hbm [thread:$0]  (%p1081_p2), %s1015_s19, 256, %s1020_s16, %s383_s7, %s818_s21, %s818_s21, %s819_s15  }
 0x15c PF: > { %p599_p6 = scmp.ge.s32.totalorder %s809_s14, 2  ;;  %s414_s26 = sand.u32 1, %s789_s9  }
 0x15d   : > { %p1082_p7 = scmp.ne.s32.totalorder %s1076_s24, 0  ;;  %s415_s30 = scalar_lea.sflag [#allocation5], %s414_s26 }
 0x15f   : > { %p595_p9 = pnand %p599_p6, %p1082_p7 }
 0x161   : > { %784 = dma.done.wait (!%p595_p9), %s415_s30, 256  }
 0x162   : > { %786 = vsyncadd (!%p595_p9), %s415_s30, 4294967040  ;;  %s21_s14 = sadd.s32 1, %s809_s14   ;;  %s1083_s9 = smov %s793_s10 }
 0x163   : > { %p18_p11 = scmp.ge.s32.totalorder %s21_s14, 5   ;;  %s1084_s10 = smov %s797_s11 }
 0x164   : > { %s1085_s11 = smov %s891_s23  ;;  %s1086_s12 = smov %s805_s13 }
 0x165   : > { %s1087_s13 = smov %s1089_s17  ;;  %20 = sbr.rel (!%p18_p11) target bundleno = 8 (0x8), region = 94 }
 0x16c   :  { %420 = vsyncpa [#allocation4], 1 }
 0x16d   :  { %422 = vsyncpa [#allocation4 + $0x1], 1 }
 0x16e   :  { %423 = vsyncpa [#allocation7], 1 }
 0x16f   :  { %425 = vsyncpa [#allocation7 + $0x1], 1 }
 0x170   :  { %426 = vsyncpa [#allocation5], 1 }
 0x171   :  { %428 = vsyncpa [#allocation5 + $0x1], 1 }

</bundles_post_ra>
